<compile_context>
chip_gen: v5e
topology: v5e:2x2
jax: 0.10.0
libtpu: 0.0.40
codegen_flags: <defaults>
</compile_context>

<pallas_src>
import math

import numpy as np
import jax
import jax.numpy as jnp
from jax.experimental import pallas as pl
from jax.experimental.pallas import tpu as pltpu


_R_MAX = 16   # RoIs per group -> stage-1 MXU M dimension = R * 8 (<= 128)


# ---------------------------------------------------------------------------
# Fused per-level kernel: one grid step = (channel tile, RoI group)
# ---------------------------------------------------------------------------
def _make_fused_kernel(R, Pp):
    """Build the fused RoIAlign kernel for a group size R and padded P rows Pp.

    Block shapes seen by the kernel:
      feat_ref : (1, ct, H, W)        bf16 NCHW slab of this group's image
      a_ref    : (1, R*Pp, H)         bf16 stacked row-interpolation matrices
      bt_ref   : (1, R, W, Q)         bf16 per-RoI column matrices, transposed
      out_ref  : (1, R, ct, Pp, Q)    pooled output (feature dtype)
      t_ref    : (ct, R*Pp, W)        bf16 VMEM scratch (fused intermediate)
    """

    def kernel(gb_ref, feat_ref, a_ref, bt_ref, out_ref, t_ref):
        del gb_ref                       # consumed by the index_maps only
        f = feat_ref[0]                  # (ct, H, W)
        a = a_ref[0]                     # (R*Pp, H)
        ct = f.shape[0]

        # Stage 1: contract H.  Channels ride the batch dim of the dot, so the
        # MXU M dimension is the full R*Pp stack of RoI rows.
        ab = jnp.broadcast_to(a[None], (ct,) + a.shape)          # (ct, R*Pp, H)
        t = jax.lax.dot_general(ab, f, (((2,), (1,)), ((0,), (0,))),
                                preferred_element_type=jnp.float32)
        t_ref[...] = t.astype(t_ref.dtype)                       # keep in VMEM

        # Stage 2: contract W, per RoI, on the VMEM-resident intermediate.
        for r in range(R):
            tr = t_ref[:, r * Pp:(r + 1) * Pp, :]                # (ct, Pp, W)
            br = jnp.broadcast_to(bt_ref[0, r][None],
                                  (ct,) + bt_ref.shape[2:])      # (ct, W, Q)
            o = jax.lax.dot_general(tr, br, (((2,), (1,)), ((0,), (0,))),
                                    preferred_element_type=jnp.float32)
            out_ref[0, r] = o.astype(out_ref.dtype)              # (ct, Pp, Q)

    return kernel


# ---------------------------------------------------------------------------
# Chip-aware channel tile / VMEM budget
# ---------------------------------------------------------------------------
def _choose_channel_tile(C, H, W, R, Pp, Q):
    """Largest channel tile (divisor of C, <=128) whose per-step footprint fits
    the chip's VMEM, plus a matching vmem_limit_bytes."""
    try:
        cap = int(pltpu.get_tpu_info().vmem_capacity_bytes)
    except Exception:
        cap = 64 * 1024 * 1024            # conservative (v7x-sized) fallback
    budget = int(cap * 0.55)

    def footprint(ct):
        feat_blk = ct * H * W * 2 * 2                 # bf16 feature, 2 buffers
        a_blk = R * Pp * H * 2 * 2
        b_blk = R * W * Q * 2 * 2
        out_blk = R * ct * Pp * Q * 4 * 2
        scratch = ct * R * Pp * W * 2                 # bf16 intermediate
        transient = ct * R * Pp * H * 2 + ct * R * Pp * W * 4
        return feat_blk + a_blk + b_blk + out_blk + scratch + transient

    ct = 1
    for d in range(min(C, 128), 0, -1):
        if C % d == 0 and footprint(d) <= budget:
            ct = d
            break
    return ct, max(32 * 1024 * 1024, int(cap * 0.8))


# ---------------------------------------------------------------------------
# Separable interpolation-weight construction (torchvision aligned=False)
# ---------------------------------------------------------------------------
def _interp_matrix(c0, c1, size_f, n_out, g, size_max):
    """Per-RoI 1-D interpolation matrix (N, n_out, size_max); g samples per bin,
    triangular (bilinear) weights, out-of-range samples 0, 1/g folded in."""
    roi_len = jnp.maximum(c1 - c0, 1.0)                                  # (N,)
    bin_sz = roi_len / n_out                                             # (N,)
    pidx = jnp.arange(n_out, dtype=jnp.float32)                          # (P,)
    sidx = jnp.arange(g, dtype=jnp.float32)                              # (g,)
    pts = (c0[:, None, None]
           + pidx[None, :, None] * bin_sz[:, None, None]
           + (sidx[None, None, :] + 0.5) * bin_sz[:, None, None] / g)    # (N,P,g)
    valid = (pts >= -1.0) & (pts <= size_f[:, None, None])
    pc = jnp.clip(pts, 0.0, size_f[:, None, None] - 1.0)
    grid = jnp.arange(size_max, dtype=jnp.float32)                       # (S,)
    w = jnp.maximum(0.0, 1.0 - jnp.abs(pc[..., None] - grid))            # (N,P,g,S)
    w = jnp.where(valid[..., None], w, 0.0)
    return (w.sum(axis=2) / g).astype(jnp.float32)                       # (N,P,S)


# ---------------------------------------------------------------------------
# One FPN level: fused RoIAlign for all RoIs assigned to this level
# ---------------------------------------------------------------------------
def _roi_align_level(feat, boxes, bidx, scale, output_size, sampling_ratio,
                     compute_dtype=jnp.bfloat16):
    """feat  : (B, C, H, W) NCHW level feature map
       boxes : (Nl, 4)  [x1, y1, x2, y2] image coordinates (device array)
       bidx  : (Nl,) numpy int32 image index per RoI, sorted non-decreasing
       returns (Nl, C, P, Q) in feat.dtype, same row order as `boxes`."""
    B, C, H, W = feat.shape
    P, Q = output_size
    Pp = 8 * ((P + 7) // 8)           # pad P rows to a sublane multiple
    g = int(sampling_ratio)
    Nl = boxes.shape[0]
    out_dtype = feat.dtype

    # ---- group RoIs per image: R RoIs per grid step, zero-padded slots ----
    counts = np.bincount(bidx, minlength=B)
    R = int(min(_R_MAX, max(1, int(counts.max()))))
    group_img, slot_of_roi, n_groups, pos = [], np.zeros(Nl, np.int64), 0, 0
    for b in range(B):
        cnt = int(counts[b])
        if cnt == 0:
            continue
        n_img_groups = -(-cnt // R)
        for i in range(cnt):
            slot_of_roi[pos + i] = (n_groups + i // R) * R + (i % R)
        group_img += [b] * n_img_groups
        n_groups += n_img_groups
        pos += cnt
    group_img = jnp.asarray(np.asarray(group_img, np.int32))
    slots = jnp.asarray(slot_of_roi.astype(np.int32))

    # ---- per-RoI separable interpolation weights at this level's size ----
    x1, y1 = boxes[:, 0] * scale, boxes[:, 1] * scale
    x2, y2 = boxes[:, 2] * scale, boxes[:, 3] * scale
    hs = jnp.full((Nl,), float(H), jnp.float32)
    ws = jnp.full((Nl,), float(W), jnp.float32)
    A = _interp_matrix(y1, y2, hs, P, g, H)                      # (Nl, P, H)
    Bm = _interp_matrix(x1, x2, ws, Q, g, W)                     # (Nl, Q, W)

    A_pad = jnp.pad(A, ((0, 0), (0, Pp - P), (0, 0)))            # (Nl, Pp, H)
    A_g = (jnp.zeros((n_groups * R, Pp, H), jnp.float32)
           .at[slots].set(A_pad)
           .reshape(n_groups, R * Pp, H).astype(compute_dtype))
    BT_g = (jnp.zeros((n_groups * R, W, Q), jnp.float32)
            .at[slots].set(jnp.transpose(Bm, (0, 2, 1)))
            .reshape(n_groups, R, W, Q).astype(compute_dtype))

    ct, vmem_limit = _choose_channel_tile(C, H, W, R, Pp, Q)
    n_ct = C // ct
    # Natural NCHW blocks are consumed directly; only a dtype cast remains.
    feat_c = feat.astype(compute_dtype)   # TODO(synk): accept bf16 NCHW features upstream

    kernel = _make_fused_kernel(R, Pp)
    pooled = pl.pallas_call(
        kernel,
        out_shape=jax.ShapeDtypeStruct((n_groups, R, C, Pp, Q), out_dtype),
        grid_spec=pltpu.PrefetchScalarGridSpec(
            num_scalar_prefetch=1,
            # Group axis innermost: consecutive groups of the same image keep
            # the same feature block index -> Pallas skips the feature re-DMA.
            grid=(n_ct, n_groups),
            in_specs=[
                pl.BlockSpec((1, ct, H, W),
                             lambda gc, gi, gb: (gb[gi], gc, 0, 0)),
                pl.BlockSpec((1, R * Pp, H),
                             lambda gc, gi, gb: (gi, 0, 0)),
                pl.BlockSpec((1, R, W, Q),
                             lambda gc, gi, gb: (gi, 0, 0, 0)),
            ],
            out_specs=pl.BlockSpec((1, R, ct, Pp, Q),
                                   lambda gc, gi, gb: (gi, 0, gc, 0, 0)),
            scratch_shapes=[pltpu.VMEM((ct, R * Pp, W), compute_dtype)],
        ),
        compiler_params=pltpu.CompilerParams(
            dimension_semantics=("arbitrary", "parallel"),
            vmem_limit_bytes=vmem_limit),
    )(group_img, feat_c, A_g, BT_g)

    pooled = pooled.reshape(n_groups * R, C, Pp, Q)[:, :, :P, :]
    return pooled[slots]                                         # (Nl, C, P, Q)


# ---------------------------------------------------------------------------
# Top-level wrapper: level assignment, per-level dispatch, scatter back
# ---------------------------------------------------------------------------
def multi_scale_roi_align(features, featmap_names, rois_list, image_shapes,
                          output_size, sampling_ratio):
    feats = [v for k, v in features.items() if k in featmap_names]
    C = feats[0].shape[1]
    P, Q = output_size

    # _convert_to_roi_format (host-side, mirroring the eager PyTorch module).
    rois_np = [np.asarray(r, np.float32) for r in rois_list]
    rois5 = np.concatenate(
        [np.concatenate([np.full((r.shape[0], 1), bi, np.float32), r], axis=1)
         for bi, r in enumerate(rois_np)], axis=0)
    N = rois5.shape[0]

    # _setup_scales (height-based scale rounded to a power of two, as in spec).
    max_h = max(s[0] for s in image_shapes)
    scales = [2.0 ** round(math.log2(float(f.shape[-2]) / float(max_h)))
              for f in feats]
    lvl_min = -math.log2(scales[0])
    lvl_max = -math.log2(scales[-1])

    # FPN level assignment (k0 = 4, canonical size 224).  Zero-area RoIs give
    # log2(0) = -inf which the clip maps to the finest level (matches ref).
    area = (rois5[:, 4] - rois5[:, 2]) * (rois5[:, 3] - rois5[:, 1])
    with np.errstate(divide="ignore", invalid="ignore"):
        k = np.floor(4.0 + np.log2(np.sqrt(area) / 224.0))
    k = np.clip(k, lvl_min, lvl_max) - lvl_min
    lvl_idx = k.astype(np.int32)
    bidx = rois5[:, 0].astype(np.int32)

    out = jnp.zeros((N, C, P, Q), feats[0].dtype)
    for li, feat in enumerate(feats):
        sel = np.nonzero(lvl_idx == li)[0]
        if sel.size == 0:
            continue
        # Sort this level's RoIs by image (stable) so consecutive grid steps
        # hit the same feature block and the feature DMA is skipped.
        sel = sel[np.argsort(bidx[sel], kind="stable")]
        boxes_l = jnp.asarray(rois5[sel, 1:5])
        out_l = _roi_align_level(feat, boxes_l, bidx[sel], scales[li],
                                 output_size, sampling_ratio)
        out = out.at[jnp.asarray(sel.astype(np.int32))].set(out_l)
    return out


# ---------------------------------------------------------------------------
# Independent numpy reference (torchvision roi_align semantics, aligned=False)
# ---------------------------------------------------------------------------
def _bilinear(feat, y, x, H, W):
    if y < -1.0 or y > H or x < -1.0 or x > W:
        return np.zeros(feat.shape[0], np.float64)
    y = min(max(y, 0.0), H - 1.0)
    x = min(max(x, 0.0), W - 1.0)
    y0 = int(np.floor(y)); x0 = int(np.floor(x))
    y1i = min(y0 + 1, H - 1); x1i = min(x0 + 1, W - 1)
    ly = y - y0; lx = x - x0; hy = 1.0 - ly; hx = 1.0 - lx
    return (hy * hx * feat[:, y0, x0] + hy * lx * feat[:, y0, x1i]
            + ly * hx * feat[:, y1i, x0] + ly * lx * feat[:, y1i, x1i])


def _reference_numpy(features, featmap_names, rois_list, image_shapes,
                     output_size, sampling_ratio):
    feats = [np.asarray(v) for k, v in features.items() if k in featmap_names]
    P, Q = output_size
    g = int(sampling_ratio)
    rois5 = np.concatenate(
        [np.concatenate([np.full((np.asarray(r).shape[0], 1), bi, np.float64),
                         np.asarray(r, np.float64)], axis=1)
         for bi, r in enumerate(rois_list)], axis=0)
    max_h = max(s[0] for s in image_shapes)
    scales = [2.0 ** round(math.log2(f.shape[-2] / float(max_h))) for f in feats]
    lvl_min = -math.log2(scales[0]); lvl_max = -math.log2(scales[-1])
    area = (rois5[:, 4] - rois5[:, 2]) * (rois5[:, 3] - rois5[:, 1])
    k = np.floor(4.0 + np.log2(np.sqrt(area) / 224.0))
    k = (np.clip(k, lvl_min, lvl_max) - lvl_min).astype(int)
    N = rois5.shape[0]; C = feats[0].shape[1]
    out = np.zeros((N, C, P, Q), np.float32)
    for n in range(N):
        lvl = k[n]; s = scales[lvl]
        feat = feats[lvl][int(rois5[n, 0])]
        H, W = feat.shape[-2:]
        x1, y1 = rois5[n, 1] * s, rois5[n, 2] * s
        x2, y2 = rois5[n, 3] * s, rois5[n, 4] * s
        roi_w = max(x2 - x1, 1.0); roi_h = max(y2 - y1, 1.0)
        bw = roi_w / Q; bh = roi_h / P
        for ph in range(P):
            for pw in range(Q):
                acc = np.zeros(C, np.float64)
                for iy in range(g):
                    y = y1 + ph * bh + (iy + 0.5) * bh / g
                    for ix in range(g):
                        x = x1 + pw * bw + (ix + 0.5) * bw / g
                        acc += _bilinear(feat, y, x, H, W)
                out[n, :, ph, pw] = acc / (g * g)
    return out


# ---------------------------------------------------------------------------
if __name__ == "__main__":
    key = jax.random.PRNGKey(0)
    k0, k1 = jax.random.split(key)

    B, C = 2, 4
    featmap_names = ["0", "1"]
    # FPN features, NCHW (like PyTorch conv outputs)
    features = {
        "0": jax.random.normal(k0, (B, C, 64, 64), jnp.float32),   # scale 1/4
        "1": jax.random.normal(k1, (B, C, 32, 32), jnp.float32),   # scale 1/8
    }
    image_shapes = [(256, 256), (256, 256)]
    # Per-image proposal boxes (x1, y1, x2, y2); mix of small / large boxes so
    # both FPN levels are exercised.
    rois_list = [
        jnp.array([[10.0, 12.0, 60.0, 70.0],
                   [5.0, 8.0, 160.0, 170.0],
                   [30.0, 40.0, 50.0, 55.0]], jnp.float32),
        jnp.array([[0.0, 0.0, 200.0, 210.0],
                   [100.0, 110.0, 140.0, 150.0],
                   [20.0, 30.0, 220.0, 235.0]], jnp.float32),
    ]
    output_size = (7, 7)
    sampling_ratio = 2

    out = multi_scale_roi_align(features, featmap_names, rois_list,
                                image_shapes, output_size, sampling_ratio)
    out = jax.block_until_ready(out)

    ref = _reference_numpy(features, featmap_names, rois_list, image_shapes,
                           output_size, sampling_ratio)
    assert out.shape == ref.shape, (out.shape, ref.shape)
    if not np.allclose(np.asarray(out), ref, rtol=5e-2, atol=5e-2):
        raise AssertionError(
            "mismatch vs numpy reference, max abs err = %e"
            % float(np.max(np.abs(np.asarray(out) - ref))))
    print("KERNEL_OK")
</pallas_src>

<mosaic_0001>
module attributes {stable_mosaic.version = 11 : i64} {
  func.func @kernel(%arg0: i32, %arg1: i32, %arg2: memref<2xi32, #tpu.memory_space<smem>>, %arg3: memref<1x4x64x64xbf16, #tpu.memory_space<vmem>>, %arg4: memref<1x16x64xbf16, #tpu.memory_space<vmem>>, %arg5: memref<1x2x64x7xbf16, #tpu.memory_space<vmem>>, %arg6: memref<1x2x4x8x7xf32, #tpu.memory_space<vmem>>, %arg7: memref<4x16x64xbf16, #tpu.memory_space<vmem>>) attributes {dimension_semantics = [#tpu.dimension_semantics<arbitrary>, #tpu.dimension_semantics<parallel>], iteration_bounds = array<i64: 1, 2>, scalar_prefetch = 1 : i64, scratch_operands = 1 : i64, tpu.core_type = #tpu.core_type<tc>, window_params = [{transform_indices = @transform_0, window_bounds = array<i64: 1, 4, 64, 64>}, {transform_indices = @transform_1, window_bounds = array<i64: 1, 16, 64>}, {transform_indices = @transform_2, window_bounds = array<i64: 1, 2, 64, 7>}, {transform_indices = @transform_3, window_bounds = array<i64: 1, 2, 4, 8, 7>}]} {
    %c0 = arith.constant 0 : index
    %c0_0 = arith.constant 0 : index
    %c0_1 = arith.constant 0 : index
    %c0_2 = arith.constant 0 : index
    %0 = vector.load %arg3[%c0, %c0_0, %c0_1, %c0_2] : memref<1x4x64x64xbf16, #tpu.memory_space<vmem>>, vector<1x4x64x64xbf16>
    %1 = vector.shape_cast %0 : vector<1x4x64x64xbf16> to vector<4x64x64xbf16>
    %c0_3 = arith.constant 0 : index
    %c0_4 = arith.constant 0 : index
    %c0_5 = arith.constant 0 : index
    %2 = vector.load %arg4[%c0_3, %c0_4, %c0_5] : memref<1x16x64xbf16, #tpu.memory_space<vmem>>, vector<1x16x64xbf16>
    %3 = vector.shape_cast %2 : vector<1x16x64xbf16> to vector<16x64xbf16>
    %4 = vector.shape_cast %3 : vector<16x64xbf16> to vector<1x16x64xbf16>
    %5 = vector.shape_cast %4 : vector<1x16x64xbf16> to vector<1x16x64xbf16>
    %6 = vector.broadcast %5 : vector<1x16x64xbf16> to vector<4x16x64xbf16>
    %cst = arith.constant dense<0.000000e+00> : vector<4x16x64xf32>
    %7 = tpu.matmul %6, %1, %cst {dimension_numbers = #tpu.dot_dimension_numbers<[2], [1], [1], [2], [0, 0, 0, 1, 1, 2], [0], [0]>} : vector<4x16x64xbf16>, vector<4x64x64xbf16>, vector<4x16x64xf32> -> vector<4x16x64xf32>
    %8 = arith.truncf %7 : vector<4x16x64xf32> to vector<4x16x64xbf16>
    %c0_6 = arith.constant 0 : index
    %c0_7 = arith.constant 0 : index
    %c0_8 = arith.constant 0 : index
    %9 = vector.load %arg7[%c0_6, %c0_7, %c0_8] : memref<4x16x64xbf16, #tpu.memory_space<vmem>>, vector<4x16x64xbf16>
    tpu.vector_store %arg7[%c0_6, %c0_7, %c0_8], %8 {strides = array<i32>} : memref<4x16x64xbf16, #tpu.memory_space<vmem>>, vector<4x16x64xbf16>,
    %c0_9 = arith.constant 0 : index
    %c0_10 = arith.constant 0 : index
    %c0_11 = arith.constant 0 : index
    %10 = vector.load %arg7[%c0_9, %c0_10, %c0_11] : memref<4x16x64xbf16, #tpu.memory_space<vmem>>, vector<4x8x64xbf16>
    %c0_12 = arith.constant 0 : index
    %c0_13 = arith.constant 0 : index
    %c0_14 = arith.constant 0 : index
    %c0_15 = arith.constant 0 : index
    %11 = vector.load %arg5[%c0_12, %c0_13, %c0_14, %c0_15] : memref<1x2x64x7xbf16, #tpu.memory_space<vmem>>, vector<1x1x64x7xbf16>
    %12 = vector.shape_cast %11 : vector<1x1x64x7xbf16> to vector<64x7xbf16>
    %13 = vector.shape_cast %12 : vector<64x7xbf16> to vector<1x64x7xbf16>
    %14 = vector.shape_cast %13 : vector<1x64x7xbf16> to vector<1x64x7xbf16>
    %15 = vector.broadcast %14 : vector<1x64x7xbf16> to vector<4x64x7xbf16>
    %cst_16 = arith.constant dense<0.000000e+00> : vector<4x8x7xf32>
    %16 = tpu.matmul %10, %15, %cst_16 {dimension_numbers = #tpu.dot_dimension_numbers<[2], [1], [1], [2], [0, 0, 0, 1, 1, 2], [0], [0]>} : vector<4x8x64xbf16>, vector<4x64x7xbf16>, vector<4x8x7xf32> -> vector<4x8x7xf32>
    %c0_17 = arith.constant 0 : index
    %c0_18 = arith.constant 0 : index
    %c0_19 = arith.constant 0 : index
    %c0_20 = arith.constant 0 : index
    %c0_21 = arith.constant 0 : index
    %17 = vector.load %arg6[%c0_17, %c0_18, %c0_19, %c0_20, %c0_21] : memref<1x2x4x8x7xf32, #tpu.memory_space<vmem>>, vector<1x1x4x8x7xf32>
    %18 = vector.shape_cast %17 : vector<1x1x4x8x7xf32> to vector<4x8x7xf32>
    %19 = vector.shape_cast %16 : vector<4x8x7xf32> to vector<1x1x4x8x7xf32>
    tpu.vector_store %arg6[%c0_17, %c0_18, %c0_19, %c0_20, %c0_21], %19 {strides = array<i32>} : memref<1x2x4x8x7xf32, #tpu.memory_space<vmem>>, vector<1x1x4x8x7xf32>,
    %c0_22 = arith.constant 0 : index
    %c8 = arith.constant 8 : index
    %c0_23 = arith.constant 0 : index
    %20 = vector.load %arg7[%c0_22, %c8, %c0_23] : memref<4x16x64xbf16, #tpu.memory_space<vmem>>, vector<4x8x64xbf16>
    %c0_24 = arith.constant 0 : index
    %c1 = arith.constant 1 : index
    %c0_25 = arith.constant 0 : index
    %c0_26 = arith.constant 0 : index
    %21 = vector.load %arg5[%c0_24, %c1, %c0_25, %c0_26] : memref<1x2x64x7xbf16, #tpu.memory_space<vmem>>, vector<1x1x64x7xbf16>
    %22 = vector.shape_cast %21 : vector<1x1x64x7xbf16> to vector<64x7xbf16>
    %23 = vector.shape_cast %22 : vector<64x7xbf16> to vector<1x64x7xbf16>
    %24 = vector.shape_cast %23 : vector<1x64x7xbf16> to vector<1x64x7xbf16>
    %25 = vector.broadcast %24 : vector<1x64x7xbf16> to vector<4x64x7xbf16>
    %cst_27 = arith.constant dense<0.000000e+00> : vector<4x8x7xf32>
    %26 = tpu.matmul %20, %25, %cst_27 {dimension_numbers = #tpu.dot_dimension_numbers<[2], [1], [1], [2], [0, 0, 0, 1, 1, 2], [0], [0]>} : vector<4x8x64xbf16>, vector<4x64x7xbf16>, vector<4x8x7xf32> -> vector<4x8x7xf32>
    %c0_28 = arith.constant 0 : index
    %c1_29 = arith.constant 1 : index
    %c0_30 = arith.constant 0 : index
    %c0_31 = arith.constant 0 : index
    %c0_32 = arith.constant 0 : index
    %27 = vector.load %arg6[%c0_28, %c1_29, %c0_30, %c0_31, %c0_32] : memref<1x2x4x8x7xf32, #tpu.memory_space<vmem>>, vector<1x1x4x8x7xf32>
    %28 = vector.shape_cast %27 : vector<1x1x4x8x7xf32> to vector<4x8x7xf32>
    %29 = vector.shape_cast %26 : vector<4x8x7xf32> to vector<1x1x4x8x7xf32>
    tpu.vector_store %arg6[%c0_28, %c1_29, %c0_30, %c0_31, %c0_32], %29 {strides = array<i32>} : memref<1x2x4x8x7xf32, #tpu.memory_space<vmem>>, vector<1x1x4x8x7xf32>,
    return
  }
  func.func @transform_0(%arg0: i32, %arg1: i32, %arg2: memref<2xi32, #tpu.memory_space<smem>>) -> (i32, i32, i32, i32) {
    %0 = arith.index_cast %arg1 : i32 to index
    %1 = memref.load %arg2[%0] : memref<2xi32, #tpu.memory_space<smem>>
    %c0_i32 = arith.constant 0 : i32
    %c0_i32_0 = arith.constant 0 : i32
    %c0_i32_1 = arith.constant 0 : i32
    return %1, %arg0, %c0_i32, %c0_i32_0 : i32, i32, i32, i32
  }
  func.func @transform_1(%arg0: i32, %arg1: i32, %arg2: memref<2xi32, #tpu.memory_space<smem>>) -> (i32, i32, i32) {
    %c0_i32 = arith.constant 0 : i32
    %c0_i32_0 = arith.constant 0 : i32
    %c0_i32_1 = arith.constant 0 : i32
    return %arg1, %c0_i32, %c0_i32_0 : i32, i32, i32
  }
  func.func @transform_2(%arg0: i32, %arg1: i32, %arg2: memref<2xi32, #tpu.memory_space<smem>>) -> (i32, i32, i32, i32) {
    %c0_i32 = arith.constant 0 : i32
    %c0_i32_0 = arith.constant 0 : i32
    %c0_i32_1 = arith.constant 0 : i32
    %c0_i32_2 = arith.constant 0 : i32
    return %arg1, %c0_i32, %c0_i32_0, %c0_i32_1 : i32, i32, i32, i32
  }
  func.func @transform_3(%arg0: i32, %arg1: i32, %arg2: memref<2xi32, #tpu.memory_space<smem>>) -> (i32, i32, i32, i32, i32) {
    %c0_i32 = arith.constant 0 : i32
    %c0_i32_0 = arith.constant 0 : i32
    %c0_i32_1 = arith.constant 0 : i32
    %c0_i32_2 = arith.constant 0 : i32
    return %arg1, %c0_i32, %arg0, %c0_i32_0, %c0_i32_1 : i32, i32, i32, i32, i32
  }
}

</mosaic_0001>

<bundles_post_ra>
// kernel: tpu_custom_call.1
= control target key start
LH: loop header
LB: loop body
LE: loop exit
PB: predicated region body
PF: predicated region fallthrough
CT: control target
= control target key end

     0   :  { %s1146_s18 = smov [#allocation4]   ;;  %s1349_s0 = inlined_call_operand.vmem [shape: s32[2], index: 0, kind: input, shape index: {}]   ;;  %s1350_s1 = inlined_call_operand.hbm [shape: bf16[2,4,64,64], index: 1, kind: input, shape index: {}]   ;;  %s1351_s2 = inlined_call_operand.vmem [shape: bf16[2,16,64], index: 2, kind: input, shape index: {}]   ;;  %s1352_s3 = inlined_call_operand.vmem [shape: bf16[2,2,64,7], index: 3, kind: input, shape index: {}]   ;;  %s1353_s4 = inlined_call_operand.vmem [shape: f32[2,2,4,8,7], index: 4, kind: output, shape index: {}]  }
   0x1   :  { %s10_s17 = sshll.u32 %s1349_s0, 4  ;;  %s11_s17 = int_to_ptr.vmem [resolvable:$true] %s10_s17 }
   0x2   :  { %13 = dma.vmem_to_smem %s11_s17, 16, %s1146_s18, [#allocation3] }
   0x3   :  { %1116 = dma.done.wait [#allocation3], 16 }
   0x4   :  { %1117 = vsyncadd [#allocation3], 4294967280 }
   0x5   :  { %16 = sfence }
   0x6   :  { %17 = vsyncpa [#allocation6], 0 }
   0x7   :  { %19 = vsyncpa [#allocation6 + $0x1], 0  ;;  %s1177_s19 = smov 0   ;;  %s1179_s20 = smov 0  }
   0x8   :  { %s1181_s21 = smov 0   ;;  %s1183_s22 = smov 0  }
   0x9   :  { %s1185_s23 = smov 0   ;;  %s1187_s24 = smov 0  }
   0xa LB: > { %s34_s0 = sadd.s32 1, %s1140_s23  ;;  %s818_s25 = sadd.s32 4294967295, %s1144_s24   ;;  %s1144_s24 = sphi %s1187_s24, %s25_s24   ;;  %s1140_s23 = sphi %s1185_s23, %s1361_s23   ;;  %s1136_s22 = sphi %s1183_s22, %s1360_s22   ;;  %s1132_s21 = sphi %s1181_s21, %s1359_s21   ;;  %s1128_s20 = sphi %s1179_s20, %s1358_s20   ;;  %s1124_s19 = sphi %s1177_s19, %s1357_s19  }
   0xb   : > { %p35_p0 = scmp.ge.s32.totalorder %s34_s0, 2  ;;  %s41_s26 = sld [smem:[#allocation4 + %s1140_s23]] }
   0xc   : > { %p55_p1 = scmp.ne.s32.totalorder %s1132_s21, %s1128_s20  ;;  %p56_p2 = scmp.eq.s32.totalorder %s1144_s24, 0 }
   0xd   : > { %s1363_s0 = smov (%p35_p0, %s34_s0), 0  ;;  %p61_p3 = scmp.ne.s32.totalorder %s1128_s20, %s1124_s19 }
   0xe   : > { %s42_s27 = sld [smem:[#allocation4 + %s1363_s0]]  ;;  %p62_p4 = scmp.eq.s32.totalorder %s818_s25, 0 }
   0xf   : > { %s165_s29 = sand.u32 1, %s1132_s21   ;;  %p57_p6 = por %p56_p2, %p55_p1 }
  0x10   : > { %p1215_p5 = por %p62_p4, %p61_p3  ;;  %s48_s30 = sadd.s32 1, %s1132_s21 }
  0x11   : > { %p998_p7 = scmp.lt.s32.totalorder %s1144_s24, 2  ;;  %s822_s6 = sshll.u32 %s165_s29, 7 }
  0x12   : > { %s988_s8 = scalar_select %p57_p6, [#allocation4], [#allocation7] }
  0x13   : > { %p1222_p9 = pnand %p998_p7, %p57_p6  ;;  %p825_p10 = scmp.ge.s32.totalorder %s1144_s24, 1 }
  0x14   : > { %s43_s5 = ssub.s32 %s41_s26, %s42_s27  ;;  %s1365_s8 = smov (!%p998_p7, %s988_s8), [#allocation8] }
  0x15   : > { %p46_p8 = scmp.eq.s32.totalorder %s43_s5, 0  ;;  %p205_p11 = scmp.lt.s32.totalorder %s1144_s24, 3 }
  0x16   : > { %s989_s10 = scalar_select %p57_p6, %s1140_s23, 0 }
  0x17   : > { %s1227_s9 = scalar_select %p46_p8, %s1132_s21, %s48_s30  }
  0x18   : > { %s1367_s10 = smov (!%p998_p7, %s989_s10), 0  ;;  %s169_s12 = scalar_lea.vmem [#allocation5], %s822_s6 }
  0x19   : > { %s170_s11 = sld [smem:[%s1365_s8 + %s1367_s10]]  ;;  %s181_s13 = sshll.u32 %s169_s12, 4  ;;  %s182_s13 = int_to_ptr.vmem [resolvable:$true] %s181_s13 }
  0x1a   : > { %p1232_p12 = pnand %p825_p10, %p205_p11  ;;  %s166_s25 = scalar_lea.sflag [#allocation6], %s165_s29 }
  0x1b   : > { %p1066_p0 = pneg %p1222_p9  ;;  %s1069_s6 = scalar_lea.hbm %s1350_s1, 256 }
  0x1f   : > { %s959_s15 = sshll.u32 %s170_s11, 7 }
  0x20   : > { %s178_s18 = scalar_lea.hbm %s1350_s1, %s959_s15 }
  0x21   : > { %s179_s19 = sshll.u32 %s178_s18, 4  ;;  %s180_s19 = int_to_ptr.hbm [resolvable:$true] %s179_s19 }
  0x22   : > { %s1062_s26 = sshra.s32 %s180_s19, 4  ;;  %s1063_s26 = int_to_ptr.hbm [resolvable:$true] %s1062_s26 }
  0x23   : > { %s1064_s27 = scalar_lea.hbm %s1063_s26, 128  ;;  %p1070_p3 = scmp.lt.s32.totalorder %s1063_s26, %s1350_s1 }
  0x24   : > { %p1065_p13 = scmp.ne.s32.totalorder %s1063_s26, %s1064_s27  ;;  %p1071_p4 = scmp.lt.s32.totalorder %s1069_s6, %s1064_s27 }
  0x26   : > { %p1067_p1 = pnand %p1066_p0, %p1065_p13  ;;  %p1072_p6 = por %p1071_p4, %p1070_p3 }
  0x28   : > { %p1068_p2 = pneg %p1067_p1 }
  0x2a   : > { %p1073_p7 = pnand %p1072_p6, %p1068_p2 }
  0x2c   : > { %1076 = shalt.err (!%p1073_p7)
}
  0x2d   : > { %s1147_s29 = smov 64   ;;  %s1148_s11 = smov 4  }
  0x2e   : > { %997 = dma.hbm_to_vmem [thread:$0]  (!%p1222_p9), %s180_s19, 2048, %s182_s13, %s166_s25, %s1147_s29, %s1147_s29, %s1148_s11  }
  0x2f   : > { %209 = sbr.rel (%p1232_p12) target bundleno = 370 (0x172), region = 32  ;;  %s211_s12 = sand.u32 (!%p1232_p12), 1, %s1128_s20  }
  0x30   : > { %s826_s15 = sshll.u32 (!%p1232_p12), %s211_s12, 7  ;;  %s212_s16 = scalar_lea.sflag (!%p1232_p12), [#allocation6], %s211_s12 }
  0x31   : > { %s1252_s17 = scalar_lea.vmem (!%p1232_p12), [#allocation5], %s826_s15 }
  0x34   : > { %1119 = dma.done.wait (%p1215_p5), %s212_s16, 2048  }
  0x35   : > { %1121 = vsyncadd (%p1215_p5), %s212_s16, 4294965248  ;;  %p255_p8 = scmp.lt.s32.totalorder %s1136_s22, 1  ;;  %v966_v0 = vld [vmem:[%s1252_s17 + $0x18] sm:$0xff]  ;;  %v965_v4 = vld [vmem:[%s1252_s17 + $0x10] sm:$0xff]  ;;  %vm339_vm0 = vcmask 523264   ;;  %vm479_vm1 = vcmask 519168  }
  0x36   : > { %v970_v1 = vld [vmem:[%s1252_s17 + $0x38] sm:$0xff]  ;;  %347 = vmatpush.bf16.msra.mxu0 %v966_v0  ;;  %v969_v5 = vld [vmem:[%s1252_s17 + $0x30] sm:$0xff]  ;;  %v964_v8 = vld [vmem:[%s1252_s17 + $0x8] sm:$0xff]  ;;  %vm588_vm2 = vcmask 56320  }
  0x37   : > { %v974_v2 = vld [vmem:[%s1252_s17 + $0x58] sm:$0xff]  ;;  %385 = vmatpush.bf16.msra.mxu1 %v970_v1  ;;  %v973_v6 = vld [vmem:[%s1252_s17 + $0x50] sm:$0xff]  ;;  %s1369_s22 = smov (!%p255_p8, %s1136_s22), 1  ;;  %v968_v9 = vld [vmem:[%s1252_s17 + $0x28] sm:$0xff] }
  0x38   : > { %v978_v3 = vld [vmem:[%s1252_s17 + $0x78] sm:$0xff]  ;;  %423 = vmatpush.bf16.msra.mxu2 %v974_v2  ;;  %v977_v7 = vld [vmem:[%s1252_s17 + $0x70] sm:$0xff]  ;;  %s961_s28 = sshll.u32 %s1369_s22, 6  ;;  %v972_v10 = vld [vmem:[%s1252_s17 + $0x48] sm:$0xff]  ;;  %s960_s7 = sshll.u32 %s1369_s22, 3 }
  0x39   : > { %461 = vmatpush.bf16.msra.mxu3 %v978_v3  ;;  %v976_v11 = vld [vmem:[%s1252_s17 + $0x68] sm:$0xff]  ;;  %s1281_s18 = scalar_lea.vmem %s1352_s3, %s961_s28  ;;  %v963_v12 = vld [vmem:[%s1252_s17] sm:$0xff]  ;;  %s259_s26 = scalar_lea.vmem %s1351_s2, %s960_s7 }
  0x3a   : > { %348 = vmatpush.bf16.msra.mxu0 %v965_v4  ;;  %v967_v13 = vld [vmem:[%s1252_s17 + $0x20] sm:$0xff]  ;;  %v983_v16 = vld [vmem:[%s1281_s18 + $0x18] sm:$0xff]  ;;  %v982_v18 = vld [vmem:[%s1281_s18 + $0x10] sm:$0xff]  ;;  %s273_s5 = scalar_lea.vmem %s1353_s4, %s961_s28 }
  0x3b   : > { %386 = vmatpush.bf16.msra.mxu1 %v969_v5  ;;  %v971_v14 = vld [vmem:[%s1252_s17 + $0x40] sm:$0xff]  ;;  %v981_v19 = vld [vmem:[%s1281_s18 + $0x8] sm:$0xff]  ;;  %v987_v21 = vld [vmem:[%s1281_s18 + $0x38] sm:$0xff] }
  0x3c   : > { %424 = vmatpush.bf16.msra.mxu2 %v973_v6  ;;  %v975_v15 = vld [vmem:[%s1252_s17 + $0x60] sm:$0xff]  ;;  %v986_v22 = vld [vmem:[%s1281_s18 + $0x30] sm:$0xff]  ;;  %v985_v23 = vld [vmem:[%s1281_s18 + $0x28] sm:$0xff] }
  0x3d   : > { %462 = vmatpush.bf16.msra.mxu3 %v977_v7  ;;  %v979_v17 = vld [vmem:[%s259_s26] sm:$0xff] }
  0x3e   : > { %349 = vmatpush.bf16.msra.mxu0 %v964_v8  ;;  %v980_v20 = vld [vmem:[%s1281_s18] sm:$0xff] }
  0x3f   : > { %387 = vmatpush.bf16.msra.mxu1 %v968_v9  ;;  %v984_v24 = vld [vmem:[%s1281_s18 + $0x20] sm:$0xff] }
  0x40   : > { %425 = vmatpush.bf16.msra.mxu2 %v972_v10 }
  0x41   : > { %463 = vmatpush.bf16.msra.mxu3 %v976_v11 }
  0x42   : > { %350 = vmatpush.bf16.msra.mxu0 %v963_v12 }
  0x43   : > { %388 = vmatpush.bf16.msra.mxu1 %v967_v13 }
  0x44   : > { %426 = vmatpush.bf16.msra.mxu2 %v971_v14 }
  0x45   : > { %464 = vmatpush.bf16.msra.mxu3 %v975_v15  ;;  %853 = vmatmul.msk.bf16.vlgmr.msra.gmra.mxu0 %vm339_vm0, %v979_v17 }
  0x46   : > { %531 = vmatpush.bf16.msrb.mxu0 %v983_v16  ;;  %870 = vmatmul.msk.bf16.vlgmr.msra.gmra.mxu1 %vm339_vm0, %v979_v17 }
  0x47   : > { %547 = vmatpush.bf16.msrb.mxu1 %v983_v16  ;;  %887 = vmatmul.msk.bf16.vlgmr.msra.gmra.mxu2 %vm339_vm0, %v979_v17 }
  0x48   : > { %904 = vmatmul.msk.bf16.vlgmr.msra.gmra.mxu3 %vm339_vm0, %v979_v17  ;;  %563 = vmatpush.bf16.msrb.mxu2 %v983_v16 }
  0x49   : > { %579 = vmatpush.bf16.msrb.mxu3 %v983_v16 }
  0x4a   : > { %532 = vmatpush.bf16.msrb.mxu0 %v982_v18 }
  0x4b   : > { %548 = vmatpush.bf16.msrb.mxu1 %v982_v18 }
  0x4c   : > { %564 = vmatpush.bf16.msrb.mxu2 %v982_v18 }
  0x4d   : > { %580 = vmatpush.bf16.msrb.mxu3 %v982_v18 }
  0x4e   : > { %533 = vmatpush.bf16.msrb.mxu0 %v981_v19 }
  0x4f   : > { %549 = vmatpush.bf16.msrb.mxu1 %v981_v19 }
  0x50   : > { %565 = vmatpush.bf16.msrb.mxu2 %v981_v19 }
  0x51   : > { %581 = vmatpush.bf16.msrb.mxu3 %v981_v19 }
  0x52   : > { %534 = vmatpush.bf16.msrb.mxu0 %v980_v20 }
  0x53   : > { %550 = vmatpush.bf16.msrb.mxu1 %v980_v20 }
  0x54   : > { %566 = vmatpush.bf16.msrb.mxu2 %v980_v20 }
  0x55   : > { %582 = vmatpush.bf16.msrb.mxu3 %v980_v20 }
  0x56   : > { %637 = vmatpush.bf16.msra.mxu0 %v987_v21 }
  0x57   : > { %653 = vmatpush.bf16.msra.mxu1 %v987_v21 }
  0x58   : > { %669 = vmatpush.bf16.msra.mxu2 %v987_v21 }
  0x59   : > { %685 = vmatpush.bf16.msra.mxu3 %v987_v21 }
  0x5a   : > { %638 = vmatpush.bf16.msra.mxu0 %v986_v22 }
  0x5b   : > { %654 = vmatpush.bf16.msra.mxu1 %v986_v22 }
  0x5c   : > { %670 = vmatpush.bf16.msra.mxu2 %v986_v22 }
  0x5d   : > { %686 = vmatpush.bf16.msra.mxu3 %v986_v22 }
  0x5e   : > { %639 = vmatpush.bf16.msra.mxu0 %v985_v23 }
  0x5f   : > { %655 = vmatpush.bf16.msra.mxu1 %v985_v23 }
  0x60   : > { %671 = vmatpush.bf16.msra.mxu2 %v985_v23 }
  0x61   : > { %687 = vmatpush.bf16.msra.mxu3 %v985_v23 }
  0x62   : > { %640 = vmatpush.bf16.msra.mxu0 %v984_v24 }
  0x63   : > { %656 = vmatpush.bf16.msra.mxu1 %v984_v24 }
  0x64   : > { %672 = vmatpush.bf16.msra.mxu2 %v984_v24 }
  0x65   : > { %688 = vmatpush.bf16.msra.mxu3 %v984_v24 }
  0xc2   : > { %v352_v25 = vpop.f32.mrf.mxu0 }
  0xc3   : > { %v390_v26 = vpop.f32.mrf.mxu1  ;;  %v471_v27 = vpack.c.bf16 %v352_v25, %v352_v25 }
  0xc4   : > { %v473_v28 = vpack.c.bf16 %v390_v26, %v390_v26 }
  0xc5   : > { %480 = vst.msk [vmem:[#allocation2] sm:$0xf] %vm479_vm1, %v471_v27 }
  0xc6   : > { %482 = vst.msk [vmem:[#allocation2 + $0x8] sm:$0xf] %vm479_vm1, %v473_v28 }
  0xca   : > { %v428_v29 = vpop.f32.mrf.mxu2  ;;  %v354_v33 = vpop.f32.mrf.mxu0 }
  0xcb   : > { %v466_v30 = vpop.f32.mrf.mxu3  ;;  %v475_v31 = vpack.c.bf16 %v428_v29, %v428_v29  ;;  %v392_v34 = vpop.f32.mrf.mxu1  ;;  %v472_v35 = vpack.c.bf16 %v354_v33, %v354_v33 }
  0xcc   : > { %v477_v32 = vpack.c.bf16 %v466_v30, %v466_v30  ;;  %v474_v36 = vpack.c.bf16 %v392_v34, %v392_v34  ;;  %v488_v37 = vld [vmem:[#allocation2] sm:$0xf] }
  0xcd   : > { %484 = vst.msk [vmem:[#allocation2 + $0x10] sm:$0xf] %vm479_vm1, %v475_v31  ;;  %921 = vmatmul.msk.bf16.vlgmr.msrb.gmra.mxu0 %vm339_vm0, %v488_v37  ;;  %v489_v38 = vld [vmem:[#allocation2 + $0x8] sm:$0xf] }
  0xce   : > { %486 = vst.msk [vmem:[#allocation2 + $0x18] sm:$0xf] %vm479_vm1, %v477_v32  ;;  %922 = vmatmul.msk.bf16.vlgmr.msrb.gmra.mxu1 %vm339_vm0, %v489_v38 }
  0xcf   : > { %481 = vst.msk [vmem:[#allocation2 + $0x4] sm:$0xf] %vm479_vm1, %v472_v35 }
  0xd0   : > { %483 = vst.msk [vmem:[#allocation2 + $0xc] sm:$0xf] %vm479_vm1, %v474_v36 }
  0xd2   : > { %v430_v39 = vpop.f32.mrf.mxu2 }
  0xd3   : > { %v468_v40 = vpop.f32.mrf.mxu3  ;;  %v476_v41 = vpack.c.bf16 %v430_v39, %v430_v39 }
  0xd4   : > { %v478_v42 = vpack.c.bf16 %v468_v40, %v468_v40  ;;  %v490_v43 = vld [vmem:[#allocation2 + $0x10] sm:$0xf] }
  0xd5   : > { %485 = vst.msk [vmem:[#allocation2 + $0x14] sm:$0xf] %vm479_vm1, %v476_v41  ;;  %923 = vmatmul.msk.bf16.vlgmr.msrb.gmra.mxu2 %vm339_vm0, %v490_v43  ;;  %v491_v44 = vld [vmem:[#allocation2 + $0x18] sm:$0xf] }
  0xd6   : > { %487 = vst.msk [vmem:[#allocation2 + $0x1c] sm:$0xf] %vm479_vm1, %v478_v42  ;;  %924 = vmatmul.msk.bf16.vlgmr.msrb.gmra.mxu3 %vm339_vm0, %v491_v44  ;;  %v593_v45 = vld [vmem:[#allocation2 + $0x4] sm:$0xf] }
  0xd7   : > { %v594_v46 = vld [vmem:[#allocation2 + $0xc] sm:$0xf] }
  0xdc   : > { %v595_v47 = vld [vmem:[#allocation2 + $0x14] sm:$0xf] }
  0xdd   : > { %949 = vmatmul.msk.bf16.vlgmr.msra.gmra.mxu0 %vm339_vm0, %v593_v45  ;;  %v596_v48 = vld [vmem:[#allocation2 + $0x1c] sm:$0xf] }
  0xde   : > { %950 = vmatmul.msk.bf16.vlgmr.msra.gmra.mxu1 %vm339_vm0, %v594_v46 }
  0xe5   : > { %951 = vmatmul.msk.bf16.vlgmr.msra.gmra.mxu2 %vm339_vm0, %v595_v47 }
  0xe6   : > { %952 = vmatmul.msk.bf16.vlgmr.msra.gmra.mxu3 %vm339_vm0, %v596_v48 }
 0x14a   : > { %v536_v49 = vpop.f32.mrf.mxu0 }
 0x14b   : > { %589 = vst.msk [vmem:[%s273_s5] sm:$0xff] %vm588_vm2, %v536_v49  ;;  %v552_v50 = vpop.f32.mrf.mxu1 }
 0x14c   : > { %590 = vst.msk [vmem:[%s273_s5 + $0x8] sm:$0xff] %vm588_vm2, %v552_v50 }
 0x152   : > { %v538_v51 = vpop.f32.mrf.mxu0 }
 0x153   : > { %v554_v52 = vpop.f32.mrf.mxu1 }
 0x158   : > { %v568_v53 = vpop.f32.mrf.mxu2 }
 0x159   : > { %591 = vst.msk [vmem:[%s273_s5 + $0x10] sm:$0xff] %vm588_vm2, %v568_v53  ;;  %v584_v54 = vpop.f32.mrf.mxu3 }
 0x15a   : > { %592 = vst.msk [vmem:[%s273_s5 + $0x18] sm:$0xff] %vm588_vm2, %v584_v54  ;;  %v642_v55 = vpop.f32.mrf.mxu0 }
 0x15b   : > { %953 = vst.msk [vmem:[%s273_s5 + $0x20] sm:$0xff] %vm588_vm2, %v642_v55  ;;  %v658_v56 = vpop.f32.mrf.mxu1 }
 0x15c   : > { %954 = vst.msk [vmem:[%s273_s5 + $0x28] sm:$0xff] %vm588_vm2, %v658_v56 }
 0x160   : > { %v570_v57 = vpop.f32.mrf.mxu2 }
 0x161   : > { %v586_v58 = vpop.f32.mrf.mxu3 }
 0x162   : > { %v644_v59 = vpop.f32.mrf.mxu0 }
 0x163   : > { %v660_v60 = vpop.f32.mrf.mxu1 }
 0x168   : > { %v674_v61 = vpop.f32.mrf.mxu2 }
 0x169   : > { %955 = vst.msk [vmem:[%s273_s5 + $0x30] sm:$0xff] %vm588_vm2, %v674_v61  ;;  %v690_v62 = vpop.f32.mrf.mxu3 }
 0x16a   : > { %956 = vst.msk [vmem:[%s273_s5 + $0x38] sm:$0xff] %vm588_vm2, %v690_v62 }
 0x170   : > { %v676_v63 = vpop.f32.mrf.mxu2 }
 0x171   : > { %v692_v0 = vpop.f32.mrf.mxu3 }
 0x172 PF: > { %s25_s24 = sadd.s32 1, %s1144_s24   ;;  %s1357_s19 = smov %s1128_s20 }
 0x173   : > { %p22_p5 = scmp.ge.s32.totalorder %s25_s24, 4   ;;  %s1358_s20 = smov %s1132_s21 }
 0x174   : > { %s1359_s21 = smov %s1227_s9  ;;  %s1360_s22 = smov %s1140_s23 }
 0x175   : > { %s1361_s23 = smov %s1363_s0  ;;  %24 = sbr.rel (!%p22_p5) target bundleno = 10 (0xa), region = 80 }
 0x17a   :  { %729 = vsyncpa [#allocation6], 1 }
 0x17b   :  { %731 = vsyncpa [#allocation6 + $0x1], 1 }

</bundles_post_ra>
